<compile_context>
chip_gen: v5e
topology: v5e:2x2
jax: 0.10.0
libtpu: 0.0.40
codegen_flags: <defaults>
</compile_context>

<pallas_src>
import functools

import jax
import jax.numpy as jnp
from jax.experimental import pallas as pl
from jax.experimental.pallas import tpu as pltpu

_LANES = 128
_MIN_KERNEL_ELEMS = 8 * _LANES          # below this a kernel launch isn't worth it
_MAX_BLOCK_BYTES = 4 << 20              # 4 MiB blocks: amortize ~0.35us/step overhead
_SUPPORTED = ("relu", "sigmoid", "leaky_relu", "sine", "tanh")


def _apply(name, x):
    if name == "relu":
        return jnp.maximum(x, jnp.zeros_like(x))
    if name == "sigmoid":
        return jax.nn.sigmoid(x)
    if name == "leaky_relu":
        # PyTorch F.leaky_relu default negative_slope=0.01; do the multiply in
        # f32 and cast back so half-precision inputs match PyTorch op-math.
        neg = (x.astype(jnp.float32) * jnp.float32(0.01)).astype(x.dtype)
        return jnp.where(x >= 0, x, neg)
    if name == "sine":
        return jnp.sin(x)
    if name == "tanh":
        return jnp.tanh(x)
    raise ValueError(f"unknown nonlinearity: {name}")


def _nonlinearity_kernel(x_ref, o_ref, *, name):
    o_ref[...] = _apply(name, x_ref[...])


def _round_up(v, m):
    return ((v + m - 1) // m) * m


@functools.lru_cache(maxsize=None)
def _dual_tensorcore():
    """Best-effort: does this chip expose 2 TensorCores to one kernel?"""
    try:
        kind = jax.devices()[0].device_kind.lower()
    except Exception:
        return False
    return any(tag in kind for tag in ("v7", "v4", "v5p"))


@functools.lru_cache(maxsize=None)
def _target_grid_steps():
    # >=4 steps per TensorCore on dual-TC chips so each core can double-buffer.
    return 8 if _dual_tensorcore() else 4


@functools.lru_cache(maxsize=None)
def _min_block_bytes():
    # Dual-TC chips accept smaller blocks to reach >=8 steps on mid-size tensors;
    # single-TC chips keep >=1 MiB blocks (~85% of HBM roofline per measured v6e).
    return (256 << 10) if _dual_tensorcore() else (1 << 20)


@functools.lru_cache(maxsize=None)
def _vmem_limit_bytes():
    # Explicit scoped-VMEM limit: v5e's 16 MiB default is too small for 4 MiB
    # blocks x 4 buffers; cap at half the physical capacity (v7x has only 64 MiB).
    try:
        cap = getattr(pltpu.get_tpu_info(), "vmem_capacity_bytes", None)
    except Exception:
        cap = None
    if cap:
        return int(min(48 << 20, max(16 << 20, cap // 2)))
    return 32 << 20


def _pick_lanes(n):
    """Widest lane-dense last dim that divides n (keeps stores unmasked)."""
    for lanes in (1024, 512, 256, 128):
        if n % lanes == 0:
            return lanes
    return None


def _choose_tile_rows(rows, lanes, itemsize):
    # Sublane granularity: bf16 packs 2 rows/sublane, int8/fp8 pack 4.
    sub = 8 if itemsize >= 4 else (16 if itemsize == 2 else 32)
    row_bytes = lanes * itemsize
    cap = max(sub, (_MAX_BLOCK_BYTES // row_bytes) // sub * sub)
    floor = max(sub, (_min_block_bytes() // row_bytes) // sub * sub)
    want = _round_up(pl.cdiv(rows, _target_grid_steps()), sub)
    tile = max(floor, min(cap, want))
    if tile >= rows:
        return rows          # whole slab in one block: no forced split on 1-TC chips
    return tile              # multiple of `sub`; Pallas masks the partial last block


def _run_slab(slab, name, donate):
    rows, lanes = slab.shape
    itemsize = slab.dtype.itemsize
    tile_rows = _choose_tile_rows(rows, lanes, itemsize)
    grid = (pl.cdiv(rows, tile_rows),)
    n_elems = rows * lanes
    transcendentals = n_elems if name in ("sigmoid", "sine", "tanh") else 0
    return pl.pallas_call(
        functools.partial(_nonlinearity_kernel, name=name),
        out_shape=jax.ShapeDtypeStruct((rows, lanes), slab.dtype),
        grid=grid,
        in_specs=[pl.BlockSpec((tile_rows, lanes), lambda i: (i, 0))],
        out_specs=pl.BlockSpec((tile_rows, lanes), lambda i: (i, 0)),
        input_output_aliases=({0: 0} if donate else {}),
        compiler_params=pltpu.CompilerParams(
            dimension_semantics=("parallel",),
            vmem_limit_bytes=_vmem_limit_bytes()),
        cost_estimate=pl.CostEstimate(
            flops=n_elems,
            transcendentals=transcendentals,
            bytes_accessed=2 * n_elems * itemsize),
    )(slab)


def nonlinearity(x, name="relu", donate=False):
    """Elementwise nonlinearity matching Nonlinearity(name).forward(x)."""
    if name not in _SUPPORTED:
        raise ValueError(f"unknown nonlinearity: {name}")
    orig_shape = x.shape
    n = x.size
    if n == 0:
        return x
    lanes = _pick_lanes(n)
    if lanes is None or n < _MIN_KERNEL_ELEMS:
        # Not 128-divisible (or tiny): a single fused XLA elementwise op is
        # already at HBM roofline -- one read + one write, no concatenate.
        return _apply(name, x)
    flat = x.reshape(-1)                       # free for contiguous inputs
    out = _run_slab(flat.reshape(n // lanes, lanes), name, donate)
    return out.reshape(orig_shape)


def _reference(x, name):
    if name == "relu":
        return jnp.maximum(x, 0)
    if name == "sigmoid":
        return jax.nn.sigmoid(x)
    if name == "leaky_relu":
        return jnp.where(x >= 0, x, 0.01 * x)
    if name == "sine":
        return jnp.sin(x)
    if name == "tanh":
        return jnp.tanh(x)
    raise ValueError(name)


if __name__ == "__main__":
    key = jax.random.PRNGKey(0)
    k_a, k_b, k_c, k_d, k_e = jax.random.split(key, 5)

    # NCHW feature map, 1024-aligned element count (2*4*16*16 = 2048).
    x_aligned = jax.random.normal(k_a, (2, 4, 16, 16), dtype=jnp.float32)
    # Ragged spatial dim: 2*4*16*17 = 2176 = 17*128 -> single-pass kernel, 128 lanes.
    x_ragged = jax.random.normal(k_b, (2, 4, 16, 17), dtype=jnp.float32)
    # bf16 exercises the 16-rows-per-sublane tiling path (relu/leaky_relu are exact-ish).
    x_bf16 = jax.random.normal(k_d, (2, 4, 16, 16), dtype=jnp.bfloat16)
    # Larger map to exercise a multi-step grid with a partial last row-block.
    x_big = jax.random.normal(k_e, (4, 8, 131, 128), dtype=jnp.float32)

    for name in _SUPPORTED:
        y = jax.block_until_ready(nonlinearity(x_aligned, name=name))
        ref = _reference(x_aligned, name)
        assert y.shape == x_aligned.shape and y.dtype == x_aligned.dtype, name
        assert jnp.allclose(y, ref, atol=1e-5, rtol=1e-5), name

    for name in _SUPPORTED:
        y = jax.block_until_ready(nonlinearity(x_ragged, name=name))
        ref = _reference(x_ragged, name)
        assert y.shape == x_ragged.shape and y.dtype == x_ragged.dtype, name
        assert jnp.allclose(y, ref, atol=1e-5, rtol=1e-5), name

    for name in ("relu", "leaky_relu"):
        y = jax.block_until_ready(nonlinearity(x_bf16, name=name))
        ref = _reference(x_bf16, name)
        assert y.shape == x_bf16.shape and y.dtype == x_bf16.dtype, name
        assert jnp.allclose(y.astype(jnp.float32), ref.astype(jnp.float32),
                            atol=1e-2, rtol=1e-2), name

    for name in ("relu", "sine"):
        y = jax.block_until_ready(nonlinearity(x_big, name=name))
        ref = _reference(x_big, name)
        assert y.shape == x_big.shape and y.dtype == x_big.dtype, name
        assert jnp.allclose(y, ref, atol=1e-5, rtol=1e-5), name

    # Buffer-donation path (P8): output reuses the donated input's HBM buffer.
    x_donate = jax.random.normal(k_c, (2, 4, 16, 16), dtype=jnp.float32)
    ref_donate = _reference(x_donate, "relu")
    donate_fn = jax.jit(functools.partial(nonlinearity, name="relu", donate=True),
                        donate_argnums=0)
    y_donate = jax.block_until_ready(donate_fn(x_donate))
    assert jnp.allclose(y_donate, ref_donate, atol=1e-6, rtol=1e-6)

    print("KERNEL_OK")
</pallas_src>

<mosaic_0001>
module attributes {stable_mosaic.version = 11 : i64} {
  func.func @_nonlinearity_kernel(%arg0: i32, %arg1: memref<2x1024xf32, #tpu.memory_space<vmem>>, %arg2: memref<2x1024xf32, #tpu.memory_space<vmem>>) attributes {dimension_semantics = [#tpu.dimension_semantics<parallel>], iteration_bounds = array<i64: 1>, scalar_prefetch = 0 : i64, scratch_operands = 0 : i64, tpu.core_type = #tpu.core_type<tc>, window_params = [{transform_indices = @transform_0, window_bounds = array<i64: 2, 1024>}, {transform_indices = @transform_1, window_bounds = array<i64: 2, 1024>}]} {
    %c0 = arith.constant 0 : index
    %c0_0 = arith.constant 0 : index
    %0 = vector.load %arg1[%c0, %c0_0] : memref<2x1024xf32, #tpu.memory_space<vmem>>, vector<2x1024xf32>
    %cst = arith.constant 0.000000e+00 : f32
    %1 = vector.broadcast %cst : f32 to vector<2x1024xf32>
    %2 = arith.maximumf %0, %1 : vector<2x1024xf32>
    %c0_1 = arith.constant 0 : index
    %c0_2 = arith.constant 0 : index
    %3 = vector.load %arg2[%c0_1, %c0_2] : memref<2x1024xf32, #tpu.memory_space<vmem>>, vector<2x1024xf32>
    tpu.vector_store %arg2[%c0_1, %c0_2], %2 {strides = array<i32>} : memref<2x1024xf32, #tpu.memory_space<vmem>>, vector<2x1024xf32>,
    return
  }
  func.func @transform_0(%arg0: i32) -> (i32, i32) {
    %c0_i32 = arith.constant 0 : i32
    %c0_i32_0 = arith.constant 0 : i32
    return %arg0, %c0_i32 : i32, i32
  }
  func.func @transform_1(%arg0: i32) -> (i32, i32) {
    %c0_i32 = arith.constant 0 : i32
    %c0_i32_0 = arith.constant 0 : i32
    return %arg0, %c0_i32 : i32, i32
  }
}

</mosaic_0001>

<bundles_post_ra>
// kernel: tpu_custom_call.1
= control target key start
LH: loop header
LB: loop body
LE: loop exit
PB: predicated region body
PF: predicated region fallthrough
CT: control target
= control target key end

     0   :  { %6 = vsyncpa [#allocation3], 0  ;;  %s118_s0 = inlined_call_operand.hbm [shape: f32[2,1024], index: 0, kind: input, shape index: {}]   ;;  %s119_s1 = inlined_call_operand.hbm [shape: f32[2,1024], index: 1, kind: output, shape index: {}]  }
   0x1   :  { %7 = vsyncpa [#allocation4], 0  ;;  %s13_s8 = sshll.u32 %s118_s0, 4  ;;  %s100_s9 = smov [#allocation2]   ;;  %s14_s8 = int_to_ptr.hbm [resolvable:$true] %s13_s8 }
   0x2   :  { %s15_s10 = sshll.u32 %s100_s9, 4  ;;  %s16_s10 = int_to_ptr.vmem [resolvable:$true] %s15_s10 }
   0x3   :  { %18 = dma.hbm_to_vmem [thread:$0]  %s14_s8, 256, %s16_s10, [#allocation3]  }
   0x4   :  { %96 = dma.done.wait [#allocation3], 256  }
   0x5   :  { %97 = vsyncadd [#allocation3], 4294967040  ;;  %s101_s11 = smov [#allocation5]   ;;  %s36_s15 = sshll.u32 %s119_s1, 4  ;;  %v23_v0 = vld [vmem:[#allocation2] sm:$0xff]  ;;  %v24_v1 = vld [vmem:[#allocation2 + $0x8] sm:$0xff]  ;;  %s37_s15 = int_to_ptr.hbm [resolvable:$true] %s36_s15 }
   0x6   :  { %s34_s12 = sshll.u32 %s101_s11, 4  ;;  %v25_v2 = vmax.f32 %v23_v0, 0.0  ;;  %v26_v3 = vmax.f32 %v24_v1, 0.0  ;;  %s35_s12 = int_to_ptr.vmem [resolvable:$true] %s34_s12 }
   0x8   :  { %27 = vst [vmem:[#allocation5] sm:$0xff] %v25_v2 }
   0x9   :  { %28 = vst [vmem:[#allocation5 + $0x8] sm:$0xff] %v26_v3 }
   0xa   :  { %39 = dma.vmem_to_hbm [thread:$0]  %s35_s12, 256, %s37_s15, [#allocation4]  }
   0xb   :  { %98 = dma.done.wait [#allocation4], 256  }
   0xc   :  { %99 = vsyncadd [#allocation4], 4294967040 }
   0xd   :  { %44 = vsyncpa [#allocation3], 1 }
   0xe   :  { %45 = vsyncpa [#allocation4], 1 }

</bundles_post_ra>
